<compile_context>
chip_gen: v7x
topology: tpu7x:2x2x1
jax: 0.10.0
libtpu: 0.0.40
codegen_flags: <defaults>
</compile_context>

<pallas_src>
import jax
import jax.numpy as jnp
from jax.experimental import pallas as pl
from jax.experimental.pallas import tpu as pltpu


def self_attention_kernel(x_ref, w1t_ref, b1_ref, w2t_ref, b2_ref, o_ref):
    bblk, s, h = x_ref.shape
    x = x_ref[...]                                        # (Bblk, S, H), input dtype

    # Tall LHS for the MXU: merge the leading (batch, seq) dims (layout-trivial merge;
    # the lane dim H is untouched).  bf16 operands, f32 accumulation.
    x2 = x.reshape(bblk * s, h).astype(jnp.bfloat16)

    hdn = jnp.dot(x2, w1t_ref[...], preferred_element_type=jnp.float32) + b1_ref[...]
    hdn = jnp.maximum(hdn, 0.0)                           # ReLU (VPU, f32)
    e = jnp.dot(hdn.astype(jnp.bfloat16), w2t_ref[...],
                preferred_element_type=jnp.float32) + b2_ref[...]

    # Softmax over the sequence axis (PyTorch dim=1), per batch row and hidden channel.
    e3 = e.reshape(bblk, s, h)                            # split leading dim back
    m = jnp.max(e3, axis=1, keepdims=True)                # (Bblk, 1, H)
    p = jnp.exp(e3 - m)                                   # (Bblk, S, H)
    denom = jnp.sum(p, axis=1, keepdims=True)             # (Bblk, 1, H)
    w = p * pl.reciprocal(denom, approx=True)             # EUP reciprocal

    # Gate the original inputs; direct store of the (Bblk, S, H) tile.
    o_ref[...] = (x.astype(jnp.float32) * w).astype(o_ref.dtype)


def _choose_batch_block(B, S, row_target=512):
    """Pick Bblk dividing B: target ~row_target MXU rows per step, but keep >=2 grid
    steps when B > 1 so both v7x TensorCores get work."""
    cap = max(1, row_target // max(S, 1))
    if B > 1:
        cap = min(cap, (B + 1) // 2)
    bblk = 1
    for d in range(1, B + 1):
        if B % d == 0 and d <= cap:
            bblk = d
    return bblk


def self_attention(x, w1, b1, w2, b2, *, batch_block=None):
    """x: (B, S, H); w1, w2: (H, H) in PyTorch (out, in) convention; b1, b2: (H,)."""
    B, S, H = x.shape
    if batch_block is None:
        batch_block = _choose_batch_block(B, S)
    assert B % batch_block == 0, "batch_block must divide B"
    grid_b = B // batch_block

    # Weights pre-transposed to (in, out) and cast to bf16 (half the DMA / resident
    # VMEM); biases stay f32 and are added after the f32-accumulated matmul.
    w1t = w1.T.astype(jnp.bfloat16)
    w2t = w2.T.astype(jnp.bfloat16)
    b1r = b1.reshape(1, H).astype(jnp.float32)
    b2r = b2.reshape(1, H).astype(jnp.float32)

    # VMEM budget: resident bf16 weights + f32 biases + double-buffered x/out blocks
    # + f32 intermediates, with generous headroom (clamped for v7x's 64 MiB VMEM).
    blk_bytes = batch_block * S * H * x.dtype.itemsize
    est = (2 * H * H * 2) + (2 * H * 4) + (2 + 2) * blk_bytes + 6 * batch_block * S * H * 4
    vmem_limit = int(min(48 << 20, max(32 << 20, 4 * est)))

    return pl.pallas_call(
        self_attention_kernel,
        out_shape=jax.ShapeDtypeStruct((B, S, H), x.dtype),
        grid_spec=pltpu.PrefetchScalarGridSpec(
            num_scalar_prefetch=0,
            grid=(grid_b,),
            in_specs=[
                pl.BlockSpec((batch_block, S, H), lambda b: (b, 0, 0)),  # x tile
                pl.BlockSpec((H, H), lambda b: (0, 0)),                  # W1^T (resident)
                pl.BlockSpec((1, H), lambda b: (0, 0)),                  # b1
                pl.BlockSpec((H, H), lambda b: (0, 0)),                  # W2^T (resident)
                pl.BlockSpec((1, H), lambda b: (0, 0)),                  # b2
            ],
            out_specs=pl.BlockSpec((batch_block, S, H), lambda b: (b, 0, 0)),
        ),
        compiler_params=pltpu.CompilerParams(
            dimension_semantics=("parallel",),
            vmem_limit_bytes=vmem_limit,
        ),
    )(x, w1t, b1r, w2t, b2r)


def self_attention_ref(x, w1, b1, w2, b2, matmul_dtype=jnp.float32):
    """Pure-JAX reference; matmul_dtype=bf16 mirrors the kernel's MXU precision."""
    H = x.shape[-1]
    xm = x.astype(matmul_dtype).reshape(-1, H)
    h = jnp.dot(xm, w1.T.astype(matmul_dtype),
                preferred_element_type=jnp.float32).reshape(x.shape) + b1
    h = jnp.maximum(h, 0.0)
    e = jnp.dot(h.astype(matmul_dtype).reshape(-1, H), w2.T.astype(matmul_dtype),
                preferred_element_type=jnp.float32).reshape(x.shape) + b2
    w = jax.nn.softmax(e, axis=1)
    return x * w


if __name__ == "__main__":
    B, S, H = 2, 8, 32
    key = jax.random.PRNGKey(0)
    kx, k1, k2, k3, k4 = jax.random.split(key, 5)

    x = jax.random.normal(kx, (B, S, H), dtype=jnp.float32)

    # Deterministic nn.Linear-style init: U(-1/sqrt(in), 1/sqrt(in))
    bound = 1.0 / float(H) ** 0.5
    w1 = jax.random.uniform(k1, (H, H), jnp.float32, -bound, bound)
    b1 = jax.random.uniform(k2, (H,), jnp.float32, -bound, bound)
    w2 = jax.random.uniform(k3, (H, H), jnp.float32, -bound, bound)
    b2 = jax.random.uniform(k4, (H,), jnp.float32, -bound, bound)

    out = jax.block_until_ready(self_attention(x, w1, b1, w2, b2))

    assert out.shape == (B, S, H)
    # Tight check vs. a reference that mirrors the kernel's bf16-matmul / f32-accumulate.
    ref_bf16 = self_attention_ref(x, w1, b1, w2, b2, matmul_dtype=jnp.bfloat16)
    assert jnp.allclose(out, ref_bf16, atol=5e-3, rtol=5e-3), "mismatch vs bf16-matmul reference"
    # Loose sanity check vs. the pure-f32 reference (bf16 matmul precision gap).
    ref_f32 = self_attention_ref(x, w1, b1, w2, b2, matmul_dtype=jnp.float32)
    assert jnp.allclose(out, ref_f32, atol=3e-2, rtol=3e-2), "mismatch vs f32 reference"

    print("KERNEL_OK")
</pallas_src>

<mosaic_0001>
module attributes {stable_mosaic.version = 11 : i64} {
  func.func @self_attention_kernel(%arg0: i32, %arg1: memref<1x8x32xf32, #tpu.memory_space<vmem>>, %arg2: memref<32x32xbf16, #tpu.memory_space<vmem>>, %arg3: memref<1x32xf32, #tpu.memory_space<vmem>>, %arg4: memref<32x32xbf16, #tpu.memory_space<vmem>>, %arg5: memref<1x32xf32, #tpu.memory_space<vmem>>, %arg6: memref<1x8x32xf32, #tpu.memory_space<vmem>>) attributes {dimension_semantics = [#tpu.dimension_semantics<parallel>], iteration_bounds = array<i64: 2>, scalar_prefetch = 0 : i64, scratch_operands = 0 : i64, tpu.core_type = #tpu.core_type<tc>, window_params = [{transform_indices = @transform_0, window_bounds = array<i64: 1, 8, 32>}, {pipeline_mode = #tpu.pipeline_mode<synchronous>, transform_indices = @transform_1, window_bounds = array<i64: 32, 32>}, {pipeline_mode = #tpu.pipeline_mode<synchronous>, transform_indices = @transform_2, window_bounds = array<i64: 1, 32>}, {pipeline_mode = #tpu.pipeline_mode<synchronous>, transform_indices = @transform_3, window_bounds = array<i64: 32, 32>}, {pipeline_mode = #tpu.pipeline_mode<synchronous>, transform_indices = @transform_4, window_bounds = array<i64: 1, 32>}, {transform_indices = @transform_5, window_bounds = array<i64: 1, 8, 32>}]} {
    %c0 = arith.constant 0 : index
    %c0_0 = arith.constant 0 : index
    %c0_1 = arith.constant 0 : index
    %0 = vector.load %arg1[%c0, %c0_0, %c0_1] : memref<1x8x32xf32, #tpu.memory_space<vmem>>, vector<1x8x32xf32>
    %1 = vector.shape_cast %0 : vector<1x8x32xf32> to vector<8x32xf32>
    %2 = arith.truncf %1 : vector<8x32xf32> to vector<8x32xbf16>
    %c0_2 = arith.constant 0 : index
    %c0_3 = arith.constant 0 : index
    %3 = vector.load %arg2[%c0_2, %c0_3] : memref<32x32xbf16, #tpu.memory_space<vmem>>, vector<32x32xbf16>
    %cst = arith.constant dense<0.000000e+00> : vector<8x32xf32>
    %4 = tpu.matmul %2, %3, %cst {dimension_numbers = #tpu.dot_dimension_numbers<[1], [0], [0], [1], [0, 0, 1, 1], [], []>} : vector<8x32xbf16>, vector<32x32xbf16>, vector<8x32xf32> -> vector<8x32xf32>
    %c0_4 = arith.constant 0 : index
    %c0_5 = arith.constant 0 : index
    %5 = vector.load %arg3[%c0_4, %c0_5] : memref<1x32xf32, #tpu.memory_space<vmem>>, vector<1x32xf32>
    %6 = vector.broadcast %5 : vector<1x32xf32> to vector<8x32xf32>
    %7 = arith.addf %4, %6 : vector<8x32xf32>
    %cst_6 = arith.constant 0.000000e+00 : f32
    %8 = vector.broadcast %cst_6 : f32 to vector<8x32xf32>
    %9 = arith.maximumf %7, %8 : vector<8x32xf32>
    %10 = arith.truncf %9 : vector<8x32xf32> to vector<8x32xbf16>
    %c0_7 = arith.constant 0 : index
    %c0_8 = arith.constant 0 : index
    %11 = vector.load %arg4[%c0_7, %c0_8] : memref<32x32xbf16, #tpu.memory_space<vmem>>, vector<32x32xbf16>
    %cst_9 = arith.constant dense<0.000000e+00> : vector<8x32xf32>
    %12 = tpu.matmul %10, %11, %cst_9 {dimension_numbers = #tpu.dot_dimension_numbers<[1], [0], [0], [1], [0, 0, 1, 1], [], []>} : vector<8x32xbf16>, vector<32x32xbf16>, vector<8x32xf32> -> vector<8x32xf32>
    %c0_10 = arith.constant 0 : index
    %c0_11 = arith.constant 0 : index
    %13 = vector.load %arg5[%c0_10, %c0_11] : memref<1x32xf32, #tpu.memory_space<vmem>>, vector<1x32xf32>
    %14 = vector.broadcast %13 : vector<1x32xf32> to vector<8x32xf32>
    %15 = arith.addf %12, %14 : vector<8x32xf32>
    %16 = vector.shape_cast %15 : vector<8x32xf32> to vector<1x8x32xf32>
    %cst_12 = arith.constant dense<0xFF800000> : vector<1x32xf32>
    %17 = vector.multi_reduction <maximumf>, %16, %cst_12 [1] : vector<1x8x32xf32> to vector<1x32xf32>
    %18 = vector.shape_cast %17 : vector<1x32xf32> to vector<1x1x32xf32>
    %19 = vector.broadcast %18 : vector<1x1x32xf32> to vector<1x8x32xf32>
    %20 = arith.subf %16, %19 : vector<1x8x32xf32>
    %21 = math.exp %20 : vector<1x8x32xf32>
    %cst_13 = arith.constant dense<0.000000e+00> : vector<1x32xf32>
    %22 = vector.multi_reduction <add>, %21, %cst_13 [1] : vector<1x8x32xf32> to vector<1x32xf32>
    %23 = vector.shape_cast %22 : vector<1x32xf32> to vector<1x1x32xf32>
    %24 = tpu.reciprocal %23 {approx = true} : vector<1x1x32xf32> -> vector<1x1x32xf32>
    %25 = vector.broadcast %24 : vector<1x1x32xf32> to vector<1x8x32xf32>
    %26 = arith.mulf %21, %25 : vector<1x8x32xf32>
    %27 = arith.mulf %0, %26 : vector<1x8x32xf32>
    %c0_14 = arith.constant 0 : index
    %c0_15 = arith.constant 0 : index
    %c0_16 = arith.constant 0 : index
    %28 = vector.load %arg6[%c0_14, %c0_15, %c0_16] : memref<1x8x32xf32, #tpu.memory_space<vmem>>, vector<1x8x32xf32>
    tpu.vector_store %arg6[%c0_14, %c0_15, %c0_16], %27 {strides = array<i32>} : memref<1x8x32xf32, #tpu.memory_space<vmem>>, vector<1x8x32xf32>,
    return
  }
  func.func @transform_0(%arg0: i32) -> (i32, i32, i32) {
    %c0_i32 = arith.constant 0 : i32
    %c0_i32_0 = arith.constant 0 : i32
    %c0_i32_1 = arith.constant 0 : i32
    return %arg0, %c0_i32, %c0_i32_0 : i32, i32, i32
  }
  func.func @transform_1(%arg0: i32) -> (i32, i32) {
    %c0_i32 = arith.constant 0 : i32
    %c0_i32_0 = arith.constant 0 : i32
    %c0_i32_1 = arith.constant 0 : i32
    return %c0_i32, %c0_i32_0 : i32, i32
  }
  func.func @transform_2(%arg0: i32) -> (i32, i32) {
    %c0_i32 = arith.constant 0 : i32
    %c0_i32_0 = arith.constant 0 : i32
    %c0_i32_1 = arith.constant 0 : i32
    return %c0_i32, %c0_i32_0 : i32, i32
  }
  func.func @transform_3(%arg0: i32) -> (i32, i32) {
    %c0_i32 = arith.constant 0 : i32
    %c0_i32_0 = arith.constant 0 : i32
    %c0_i32_1 = arith.constant 0 : i32
    return %c0_i32, %c0_i32_0 : i32, i32
  }
  func.func @transform_4(%arg0: i32) -> (i32, i32) {
    %c0_i32 = arith.constant 0 : i32
    %c0_i32_0 = arith.constant 0 : i32
    %c0_i32_1 = arith.constant 0 : i32
    return %c0_i32, %c0_i32_0 : i32, i32
  }
  func.func @transform_5(%arg0: i32) -> (i32, i32, i32) {
    %c0_i32 = arith.constant 0 : i32
    %c0_i32_0 = arith.constant 0 : i32
    %c0_i32_1 = arith.constant 0 : i32
    return %arg0, %c0_i32, %c0_i32_0 : i32, i32, i32
  }
}

</mosaic_0001>

<bundles_post_ra>
// kernel: tpu_custom_call.1
= control target key start
LH: loop header
LB: loop body
LE: loop exit
PB: predicated region body
PF: predicated region fallthrough
CT: control target
= control target key end

     0   :  { %10 = vsyncpa [#allocation3], 0  ;;  %s1096_s0 = inlined_call_operand.hbm [shape: f32[2,8,32], index: 0, kind: input, shape index: {}]   ;;  %s1097_s1 = inlined_call_operand.hbm [shape: bf16[32,32], index: 1, kind: input, shape index: {}]   ;;  %s1098_s2 = inlined_call_operand.vmem [shape: f32[1,32], index: 2, kind: input, shape index: {}]   ;;  %s1099_s3 = inlined_call_operand.hbm [shape: bf16[32,32], index: 3, kind: input, shape index: {}]   ;;  %s1100_s4 = inlined_call_operand.vmem [shape: f32[1,32], index: 4, kind: input, shape index: {}]   ;;  %s1101_s5 = inlined_call_operand.hbm [shape: f32[2,8,32], index: 5, kind: output, shape index: {}]  }
   0x1   :  { %12 = vsyncpa [#allocation3 + $0x1], 0 }
   0x2   :  { %13 = vsyncpa [#allocation6], 0 }
   0x3   :  { %14 = vsyncpa [#allocation4], 0 }
   0x4   :  { %16 = vsyncpa [#allocation4 + $0x1], 0  ;;  %s852_s18 = smov 0   ;;  %s854_s19 = smov 0  }
   0x5   :  { %s856_s20 = smov 0   ;;  %s858_s21 = smov 0  }
   0x6 LB: > { %s873_s22 = sadd.s32 4294967295, %s812_s21   ;;  %s531_s23 = sadd.s32 4294967294, %s812_s21   ;;  %s812_s21 = sphi %s858_s21, %s1121_s21   ;;  %s808_s20 = sphi %s856_s20, %s1120_s20   ;;  %s804_s19 = sphi %s854_s19, %s1119_s19   ;;  %s800_s18 = sphi %s852_s18, %s1118_s18  }
   0x7   : > { %p42_p0 = scmp.ne.s32.totalorder %s804_s19, %s800_s18  ;;  %p1102_p1 = scmp.eq.s32.totalorder %s873_s22, 0 }
   0x8   : > { %p156_p3 = scmp.eq.s32.totalorder %s531_s23, 1  ;;  %p532_p5 = scmp.ge.s32.totalorder %s812_s21, 1 }
   0x9   : > { %p882_p4 = por %p1102_p1, %p42_p0  ;;  %p163_p7 = scmp.lt.s32.totalorder %s812_s21, 3 }
   0xa   : > { %p887_p6 = por %p156_p3, %p42_p0  ;;  %s814_s27 = smov [#allocation5]  }
   0xb   : > { %s1105_s24 = scalar_select %p882_p4, 1, 0 }
   0xc   : > { %s1106_s25 = scalar_select %p887_p6, 1, 0 }
   0xd   : > { %p892_p8 = pnand %p532_p5, %p163_p7  ;;  %s175_s28 = sshll.u32 %s814_s27, 4  ;;  %s896_s28 = int_to_ptr.vmem [resolvable:$true] %s175_s28 }
   0xe   : > { %s815_s30 = smov [#allocation7]   ;;  %s656_s9 = scalar_lea.hbm %s1097_s1, 256 }
   0xf   : > { %p589_p9 = pneg %p892_p8  ;;  %s191_s6 = sshll.u32 %s815_s30, 4  ;;  %s907_s6 = int_to_ptr.vmem [resolvable:$true] %s191_s6 }
  0x10   : > { %p657_p12 = scmp.ne.s32.totalorder %s1097_s1, %s656_s9  ;;  %p663_p5 = scmp.lt.u32.totalorder %s656_s9, %s1097_s1 }
  0x11   : > { %p903_p11 = pnand %p589_p9, %p1102_p1 }
  0x13   : > { %p658_p13 = pneg %p903_p11 }
  0x15   : > { %p659_p0 = pnand %p658_p13, %p657_p12 }
  0x17   : > { %p660_p3 = pneg %p659_p0 }
  0x19   : > { %p665_p7 = pnand %p663_p5, %p660_p3 }
  0x1b   : > { %668 = shalt.err (!%p665_p7)
}
  0x1c   : > { %s669_s14 = scalar_lea.vmem %s896_s28, 256  ;;  %p677_p2 = scmp.lt.s32.totalorder %s896_s28, %s896_s28 }
  0x1d   : > { %p670_p9 = scmp.ne.s32.totalorder %s896_s28, %s669_s14  ;;  %p678_p12 = scmp.lt.s32.totalorder %s669_s14, %s669_s14 }
  0x1f   : > { %p672_p10 = pnand %p670_p9, %p658_p13  ;;  %p679_p0 = por %p678_p12, %p677_p2 }
  0x21   : > { %p673_p1 = pneg %p672_p10 }
  0x23   : > { %p680_p6 = pnand %p679_p0, %p673_p1 }
  0x25   : > { %683 = shalt.err (!%p680_p6)
}
  0x26   : > { %s816_s15 = smov 64   ;;  %s817_s16 = smov 4  }
  0x27   : > { %592 = dma.hbm_to_vmem [thread:$0]  (!%p903_p11), %s1097_s1, 256, %s896_s28, [#allocation6], %s816_s15, %s816_s15, %s817_s16  }
  0x28   : > { %s684_s7 = scalar_lea.hbm %s1099_s3, 256 }
  0x29   : > { %p685_p2 = scmp.ne.s32.totalorder %s1099_s3, %s684_s7  ;;  %p691_p10 = scmp.lt.u32.totalorder %s684_s7, %s1099_s3 }
  0x2b   : > { %p687_p1 = pnand %p685_p2, %p658_p13 }
  0x2d   : > { %p688_p6 = pneg %p687_p1 }
  0x2f   : > { %p693_p3 = pnand %p691_p10, %p688_p6 }
  0x31   : > { %696 = shalt.err (!%p693_p3)
}
  0x32   : > { %s697_s28 = scalar_lea.vmem %s907_s6, 256  ;;  %p705_p12 = scmp.lt.s32.totalorder %s907_s6, %s907_s6 }
  0x33   : > { %p698_p5 = scmp.ne.s32.totalorder %s907_s6, %s697_s28  ;;  %p706_p0 = scmp.lt.s32.totalorder %s697_s28, %s697_s28 }
  0x35   : > { %p700_p7 = pnand %p698_p5, %p658_p13  ;;  %p707_p2 = por %p706_p0, %p705_p12 }
  0x37   : > { %p701_p9 = pneg %p700_p7 }
  0x39   : > { %p708_p1 = pnand %p707_p2, %p701_p9 }
  0x3b   : > { %711 = shalt.err (!%p708_p1)
}
  0x3c   : > { %595 = dma.hbm_to_vmem [thread:$0]  (!%p903_p11), %s1099_s3, 256, %s907_s6, [#allocation6], %s816_s15, %s816_s15, %s817_s16  }
  0x3d   : > { %s962_s14 = sadd.s32 1, %s812_s21   ;;  %s29_s29 = sadd.s32 1, %s808_s20 }
  0x3e   : > { %s26_s17 = ssub.s32 %s812_s21, %s962_s14  ;;  %p36_p13 = scmp.ne.s32.totalorder %s808_s20, %s804_s19 }
  0x3f   : > { %p27_p6 = scmp.eq.s32.totalorder %s26_s17, 0  ;;  %p37_p10 = scmp.eq.s32.totalorder %s812_s21, 0 }
  0x40   : > { %p1109_p3 = scmp.eq.s32.totalorder %s873_s22, 1  ;;  %p606_p7 = scmp.lt.s32.totalorder %s812_s21, 2 }
  0x41   : > { %s978_s27 = scalar_select %p27_p6, %s808_s20, %s29_s29  }
  0x42   : > { %p972_p5 = por %p1109_p3, %p36_p13  ;;  %p38_p9 = por %p37_p10, %p36_p13 }
  0x43   : > { %s208_s30 = sand.u32 1, %s808_s20   ;;  %s537_s6 = sshll.u32 %s812_s21, 7 }
  0x44   : > { %s1110_s23 = scalar_select %p972_p5, 1, 0 }
  0x45   : > { %s536_s7 = sshll.u32 %s208_s30, 3  ;;  %s985_s8 = scalar_lea.hbm %s1096_s0, %s537_s6 }
  0x46   : > { %s212_s9 = scalar_lea.vmem [#allocation2], %s536_s7  ;;  %p989_p11 = pnand %p606_p7, %p38_p9 }
  0x47   : > { %s219_s10 = sshll.u32 %s212_s9, 4  ;;  %s209_s28 = scalar_lea.sflag [#allocation3], %s208_s30  ;;  %s987_s10 = int_to_ptr.vmem [resolvable:$true] %s219_s10 }
  0x48   : > { %s712_s12 = scalar_lea.hbm %s985_s8, 128  ;;  %p714_p0 = pneg %p989_p11 }
  0x49   : > { %p713_p12 = scmp.ne.s32.totalorder %s985_s8, %s712_s12  ;;  %s717_s17 = scalar_lea.hbm %s1096_s0, 256 }
  0x4a   : > { %p718_p13 = scmp.lt.u32.totalorder %s985_s8, %s1096_s0  ;;  %p719_p6 = scmp.lt.u32.totalorder %s717_s17, %s712_s12 }
  0x4b   : > { %p715_p2 = pnand %p714_p0, %p713_p12  ;;  %p721_p3 = scmp.lt.u32.totalorder %s712_s12, %s985_s8 }
  0x4c   : > { %p720_p10 = por %p719_p6, %p718_p13 }
  0x4d   : > { %p716_p1 = pneg %p715_p2 }
  0x4e   : > { %p722_p7 = por %p721_p3, %p720_p10 }
  0x50   : > { %p723_p9 = pnand %p722_p7, %p716_p1 }
  0x52   : > { %726 = shalt.err (!%p723_p9)
}
  0x53   : > { %s727_s30 = scalar_lea.vmem %s987_s10, 128  ;;  %s818_s15 = smov [#allocation2]  }
  0x54   : > { %p728_p12 = scmp.ne.s32.totalorder %s987_s10, %s727_s30  ;;  %s732_s16 = sshll.u32 %s818_s15, 4  ;;  %s733_s16 = int_to_ptr.vmem [resolvable:$false] %s732_s16 }
  0x55   : > { %s734_s9 = scalar_lea.vmem %s733_s16, 256  ;;  %p735_p4 = scmp.lt.s32.totalorder %s987_s10, %s733_s16 }
  0x56   : > { %p730_p2 = pnand %p728_p12, %p714_p0  ;;  %p736_p13 = scmp.lt.s32.totalorder %s734_s9, %s727_s30 }
  0x58   : > { %p731_p5 = pneg %p730_p2  ;;  %p737_p6 = por %p736_p13, %p735_p4 }
  0x5a   : > { %p738_p10 = pnand %p737_p6, %p731_p5 }
  0x5c   : > { %741 = shalt.err (!%p738_p10)
}
  0x5d   : > { %599 = dma.hbm_to_vmem [thread:$0]  (!%p989_p11), %s985_s8, 128, %s987_s10, %s209_s28  }
  0x5e   : > { %228 = sbr.rel (%p892_p8) target bundleno = 617 (0x269), region = 40  ;;  %s1021_s12 = sand.u32 (!%p892_p8), 1, %s804_s19  }
  0x5f   : > { %s539_s13 = sshll.u32 (!%p892_p8), %s1021_s12, 3  ;;  %s231_s29 = scalar_lea.sflag (!%p892_p8), [#allocation3], %s1021_s12 }
  0x60   : > { %s234_s17 = scalar_lea.vmem (!%p892_p8), [#allocation2], %s539_s13  ;;  %p1112_p4 = scmp.ne.s32.totalorder (!%p892_p8), %s1105_s24, 0 }
  0x65   : > { %787 = dma.done.wait (%p1112_p4), %s231_s29, 128  }
  0x66   : > { %789 = vsyncadd (%p1112_p4), %s231_s29, 4294967168  ;;  %p1113_p5 = scmp.eq.s32.totalorder %s873_s22, 0 }
  0x68   : > { %791 = dma.done.wait (%p1113_p5), [#allocation6], 512   ;;  %p1114_p8 = pmov %p1113_p5 }
  0x69   : > { %v819_v0 = vmov 0.0   ;;  %vm820_vm0 = vmmov 0   ;;  %v648_v1 = vld [vmem:[#allocation5] sm:$0xff]   ;;  %v649_v2 = vld [vmem:[#allocation5 + $0x8] sm:$0xff]   ;;  %v270_v3 = vld [vmem:[%s234_s17] sm:$0xff]  ;;  %vm295_vm1 = vcmask 261120  }
  0x6a   : > { %793 = vsyncadd (%p1114_p8), [#allocation6], 4294966784  ;;  %561 = vmatprep.subr.bf16.mxu0 %v819_v0  ;;  %565 = vmatprep.mubr.msk.bf16.mxu0 %vm820_vm0, %v819_v0  ;;  %v271_v4 = vpack.c.bf16 %v270_v3, %v270_v3  ;;  %v650_v5 = vld [vmem:[#allocation7] sm:$0xff]   ;;  %v651_v6 = vld [vmem:[#allocation7 + $0x8] sm:$0xff]   ;;  %s552_s11 = sshll.u32 %s873_s22, 7  ;;  %s268_s28 = scalar_lea.vmem [#allocation8], %s539_s13 }
  0x6b   : > { %569 = vmatprep.subr.bf16.mxu1 %v819_v0  ;;  %573 = vmatprep.mubr.msk.bf16.mxu1 %vm820_vm0, %v819_v0  ;;  %v543_v7 = vld [vmem:[%s1098_s2] ss:$0 sm:$0xff]  ;;  %s442_s7 = sshll.u32 %s268_s28, 4  ;;  %s1051_s15 = scalar_lea.hbm %s1101_s5, %s552_s11  ;;  %s1053_s7 = int_to_ptr.vmem [resolvable:$true] %s442_s7 }
  0x6c   : > { %562 = vmatpush3.bf16.msra.mxu0 %v648_v1  ;;  %570 = vmatpush3.bf16.msra.mxu1 %v650_v5  ;;  %v547_v15 = vld [vmem:[%s1100_s4] ss:$0 sm:$0xff]  ;;  %s429_s16 = scalar_lea.sflag [#allocation4], %s1021_s12  ;;  %s742_s9 = scalar_lea.vmem %s1053_s7, 128 }
  0x6d   : > { %563 = vmatprep.subr.bf16.mxu0 %v819_v0  ;;  %571 = vmatprep.subr.bf16.mxu1 %v819_v0  ;;  %p743_p11 = scmp.ne.s32.totalorder %s1053_s7, %s742_s9  ;;  %p1115_p0 = scmp.ne.s32.totalorder %s1110_s23, 0 }
  0x6e   : > { %s821_s22 = smov [#allocation8]  }
  0x6f   : > { %p744_p1 = pnand %p743_p11, %p1115_p0  ;;  %s746_s13 = sshll.u32 %s821_s22, 4  ;;  %s747_s13 = int_to_ptr.vmem [resolvable:$false] %s746_s13 }
  0x70   : > { %564 = vmatpush3.bf16.msra.mxu0 %v649_v2  ;;  %572 = vmatpush3.bf16.msra.mxu1 %v651_v6  ;;  %s748_s29 = scalar_lea.vmem %s747_s13, 256  ;;  %p749_p7 = scmp.lt.s32.totalorder %s1053_s7, %s747_s13 }
  0x71   : > { %p745_p3 = pneg %p744_p1  ;;  %p750_p9 = scmp.lt.s32.totalorder %s748_s29, %s742_s9 }
  0x73   : > { %566 = vmatmul.mubr.msk.bf16.vlgmr.msra.gmra.mrb[0].mxu0 %vm295_vm1, %v271_v4  ;;  %p751_p12 = por %p750_p9, %p749_p7 }
  0x75   : > { %p752_p2 = pnand %p751_p12, %p745_p3 }
 0x146   : > { %v333_v8 = vpop.f32.mrb[0].mxu0 }
 0x147   : > { %v334_v9 = vadd.f32 %v543_v7, %v333_v8  ;;  %v567_v10 = vpop.f32.mrb[1].mxu0 }
 0x148   : > { %v336_v11 = vpop.f32.mrb[2].mxu0 }
 0x149   : > { %v339_v12 = vmax.f32 %v334_v9, 0.0  ;;  %v568_v13 = vpop.f32.mrb[3].mxu0 }
 0x14b   : > { %v340_v14 = vpack.c.bf16 %v339_v12, %v339_v12 }
 0x14d   : > { %574 = vmatmul.mubr.msk.bf16.vlgmr.msra.gmra.mrb[0].mxu1 %vm295_vm1, %v340_v14 }
 0x220   : > { %v401_v16 = vpop.f32.mrb[0].mxu1 }
 0x221   : > { %v402_v17 = vadd.f32 %v547_v15, %v401_v16  ;;  %v575_v18 = vpop.f32.mrb[1].mxu1 }
 0x222   : > { %v404_v19 = vpop.f32.mrb[2].mxu1 }
 0x223   : > { %v407_v20 = vsel %vm295_vm1, %v402_v17, -inf  ;;  %v576_v21 = vpop.f32.mrb[3].mxu1 }
 0x224   : > { %v408_v22 = vrot.slane %v407_v20, 4 }
 0x226   : > { %v409_v23 = vmax.f32 %v407_v20, %v408_v22 }
 0x228   : > { %v410_v24 = vrot.slane %v409_v23, 2 }
 0x22a   : > { %v411_v25 = vmax.f32 %v409_v23, %v410_v24 }
 0x22c   : > { %v412_v26 = vrot.slane %v411_v25, 1 }
 0x22e   : > { %v413_v27 = vmax.f32 %v411_v25, %v412_v26 }
 0x230   : > { %v414_v28 = vsub.f32 %v402_v17, %v413_v27 }
 0x232   : > { %v415_v29 = vmul.f32 1.442695, %v414_v28 }
 0x234   : > { %652 = vpow2.f32 %v415_v29 }
 0x23e   : > { %v653_v30 = vpop.eup %652 }
 0x23f   : > { %v417_v31 = vsel %vm295_vm1, %v653_v30, 0.0 }
 0x240   : > { %v418_v32 = vrot.slane %v417_v31, 4 }
 0x242   : > { %v419_v33 = vadd.f32 %v418_v32, %v417_v31 }
 0x244   : > { %v420_v34 = vrot.slane %v419_v33, 2 }
 0x246   : > { %v421_v35 = vadd.f32 %v420_v34, %v419_v33 }
 0x248   : > { %v422_v36 = vrot.slane %v421_v35, 1 }
 0x24a   : > { %v423_v37 = vadd.f32 %v422_v36, %v421_v35 }
 0x24c   : > { %654 = vrcp.f32 %v423_v37 }
 0x256   : > { %v655_v38 = vpop.eup %654 }
 0x257   : > { %v425_v39 = vmul.f32 %v655_v38, %v653_v30 }
 0x259   : > { %v426_v40 = vmul.f32 %v425_v39, %v270_v3 }
 0x25b   : > { %427 = vst.msk [vmem:[%s268_s28] sm:$0xff] %vm295_vm1, %v426_v40 }
 0x25c   : > { %755 = shalt.err (!%p752_p2)
}
 0x25d   : > { %s756_s12 = scalar_lea.hbm %s1051_s15, 128  ;;  %s760_s26 = scalar_lea.hbm %s1101_s5, 256 }
 0x25e   : > { %p757_p13 = scmp.ne.s32.totalorder %s1051_s15, %s756_s12  ;;  %p761_p4 = scmp.lt.u32.totalorder %s1051_s15, %s1101_s5 }
 0x25f   : > { %p762_p5 = scmp.lt.u32.totalorder %s760_s26, %s756_s12  ;;  %p764_p11 = scmp.lt.u32.totalorder %s756_s12, %s1051_s15 }
 0x260   : > { %p758_p6 = pnand %p757_p13, %p1115_p0 }
 0x261   : > { %p763_p8 = por %p762_p5, %p761_p4 }
 0x262   : > { %p759_p10 = pneg %p758_p6 }
 0x263   : > { %p765_p1 = por %p764_p11, %p763_p8 }
 0x265   : > { %p766_p3 = pnand %p765_p1, %p759_p10 }
 0x267   : > { %769 = shalt.err (!%p766_p3)
}
 0x268   : > { %587 = dma.vmem_to_hbm [thread:$0]  (%p1115_p0), %s1053_s7, 128, %s1051_s15, %s429_s16  }
 0x269 PF: > { %s454_s11 = sand.u32 1, %s800_s18   ;;  %p1116_p7 = scmp.ne.s32.totalorder %s1106_s25, 0 }
 0x26a   : > { %p1117_p9 = scmp.ge.s32.totalorder %s812_s21, 2  ;;  %s455_s28 = scalar_lea.sflag [#allocation4], %s454_s11 }
 0x26c   : > { %p601_p12 = pnand %p1117_p9, %p1116_p7 }
 0x26e   : > { %795 = dma.done.wait (!%p601_p12), %s455_s28, 128  }
 0x26f   : > { %797 = vsyncadd (!%p601_p12), %s455_s28, 4294967168  ;;  %p19_p2 = scmp.ge.s32.totalorder %s962_s14, 4   ;;  %s1118_s18 = smov %s804_s19 }
 0x270   : > { %s1119_s19 = smov %s808_s20  ;;  %s1120_s20 = smov %s978_s27 }
 0x271   : > { %s1121_s21 = smov %s962_s14  ;;  %21 = sbr.rel (!%p19_p2) target bundleno = 6 (0x6), region = 93 }
 0x278   :  { %460 = vsyncpa [#allocation3], 1 }
 0x279   :  { %462 = vsyncpa [#allocation3 + $0x1], 1 }
 0x27a   :  { %463 = vsyncpa [#allocation6], 1 }
 0x27b   :  { %464 = vsyncpa [#allocation4], 1 }
 0x27c   :  { %466 = vsyncpa [#allocation4 + $0x1], 1 }

</bundles_post_ra>
